<compile_context>
chip_gen: v5e
topology: v5e:2x2
jax: 0.10.0
libtpu: 0.0.40
codegen_flags: <defaults>
</compile_context>

<pallas_src>
import jax
import jax.numpy as jnp
from jax.experimental import pallas as pl
from jax.experimental.pallas import tpu as pltpu


def _round_up(v, m):
    return ((v + m - 1) // m) * m


def _cdiv(a, b):
    return -(-a // b)


def _lane(v):
    return _round_up(max(v, 1), 128)


def patch_len(n, epochs):
    """Same chunking rule as the PyTorch module."""
    base = n // epochs
    lens = [base] * epochs
    for i in range(n - base * epochs):
        lens[i] += 1
    assert sum(lens) == n, "check your epochs: axis should be split again"
    return lens


def _vmem_budget_bytes():
    """(tile budget, vmem_limit_bytes) chosen per chip generation."""
    phys = 64 * 1024 * 1024                       # conservative (v7x-sized) default
    try:
        info = pltpu.get_tpu_info()
        phys = int(getattr(info, "vmem_capacity_bytes", phys))
    except Exception:
        pass
    if phys >= 100 * 1024 * 1024:                 # v5e / v6e: 128 MiB physical VMEM
        return 48 * 1024 * 1024, 96 * 1024 * 1024
    return 24 * 1024 * 1024, 32 * 1024 * 1024     # v7x: 64 MiB phys / 32 MiB scoped


def _choose_e_block(epochs, per_epoch_bytes, batch, budget):
    """Largest epoch block fitting the VMEM budget; even grid for B == 1."""
    e_blk = max(1, min(epochs, budget // max(per_epoch_bytes, 1)))
    if batch == 1 and epochs >= 2:
        # Keep an even number of grid steps so both v7x TensorCores split the
        # work evenly (single-TC v5e/v6e are unaffected).  Prefer the largest
        # block with the least epoch padding.
        best = None
        for eb in range(e_blk, 0, -1):
            g = _cdiv(epochs, eb)
            if g % 2 == 0:
                waste = g * eb - epochs
                if best is None or waste < best[1]:
                    best = (eb, waste)
                if waste == 0:
                    break
        if best is not None:
            e_blk = best[0]
    return e_blk


# ----------------------------------------------------------------------------
# Primary path: fused, repack-free.
# ----------------------------------------------------------------------------
def _e2r_fused(x, epochs, starts, lens, out_dtype, vmem_limit):
    B, N, T = x.shape

    def kernel(x_ref, o_ref):
        # x_ref: (N, T) full time slab for one batch element.
        # o_ref: (epochs, N, N) exact (unpadded) Gram stack for that element.
        for i, (s, le) in enumerate(zip(starts, lens)):
            if le == 0:
                o_ref[i] = jnp.zeros(o_ref.shape[1:], o_ref.dtype)
                continue
            xc = x_ref[:, s:s + le]                        # static slice (N, le)
            gram = jax.lax.dot_general(                    # X @ X^T, no transpose op
                xc, xc,
                dimension_numbers=(((1,), (1,)), ((), ())),
                preferred_element_type=jnp.float32)        # (N, N)
            o_ref[i] = gram.astype(o_ref.dtype)

    return pl.pallas_call(
        kernel,
        out_shape=jax.ShapeDtypeStruct((B, epochs, N, N), out_dtype),
        grid_spec=pltpu.PrefetchScalarGridSpec(
            num_scalar_prefetch=0,
            grid=(B,),
            in_specs=[
                # Block covers full (N, T) dims -> (8,128) rule satisfied via
                # the full-dim exception; HBM read is exactly N*T elements.
                pl.BlockSpec((pl.Squeezed(), N, T), lambda b: (b, 0, 0)),
            ],
            out_specs=pl.BlockSpec((pl.Squeezed(), epochs, N, N),
                                   lambda b: (b, 0, 0, 0)),
        ),
        compiler_params=pltpu.CompilerParams(
            dimension_semantics=("parallel",),
            vmem_limit_bytes=vmem_limit,
        ),
    )(x)


# ----------------------------------------------------------------------------
# Fallback path: repacked epoch blocks (only for slabs too big for VMEM).
# ----------------------------------------------------------------------------
def _e2r_repack(x, epochs, lens, lmax, Nr, out_dtype, budget, vmem_limit):
    B, N, T = x.shape
    in_bytes = jnp.dtype(x.dtype).itemsize
    out_bytes = jnp.dtype(out_dtype).itemsize

    # VMEM accounting per epoch: double-buffered input + output tiles plus the
    # in-kernel f32 gram temporary (lane-padded layout inside VMEM).
    per_epoch = (2 * Nr * _lane(lmax) * in_bytes
                 + 2 * Nr * _lane(Nr) * out_bytes
                 + Nr * _lane(Nr) * 4)
    e_blk = _choose_e_block(epochs, per_epoch, B, budget)
    eb_grid = _cdiv(epochs, e_blk)
    e_pad = eb_grid * e_blk

    # Repack glue: (B, e_pad, Nr, lmax), zero-padded (zeros are free in X @ X^T).
    # Time axis padded only to lmax (full last dim), rows to Nr = round_up(N, 8).
    if T % epochs == 0:
        base = T // epochs                                   # == lmax
        xp = x.reshape(B, N, epochs, base).transpose(0, 2, 1, 3)   # (B,E,N,base)
        xp = jnp.pad(xp, ((0, 0), (0, e_pad - epochs), (0, Nr - N), (0, 0)))
    else:
        chunks = []
        start = 0
        for le in lens:
            c = x[:, :, start:start + le]                    # (B, N, le)
            chunks.append(jnp.pad(c, ((0, 0), (0, 0), (0, lmax - le))))
            start += le
        xp = jnp.stack(chunks, axis=1)                       # (B, E, N, lmax)
        xp = jnp.pad(xp, ((0, 0), (0, e_pad - epochs), (0, Nr - N), (0, 0)))

    def kernel(x_ref, o_ref):
        # x_ref: (e_blk, Nr, lmax) zero-padded chunks for e_blk epochs.
        # o_ref: (e_blk, Nr, Nr)   Gram slab, written directly (no concat/pad).
        xv = x_ref[...]
        o_ref[...] = jax.lax.dot_general(
            xv, xv,
            dimension_numbers=(((2,), (2,)), ((0,), (0,))),
            preferred_element_type=jnp.float32).astype(o_ref.dtype)

    out = pl.pallas_call(
        kernel,
        out_shape=jax.ShapeDtypeStruct((B, e_pad, Nr, Nr), out_dtype),
        grid_spec=pltpu.PrefetchScalarGridSpec(
            num_scalar_prefetch=0,
            grid=(B, eb_grid),
            in_specs=[
                pl.BlockSpec((pl.Squeezed(), e_blk, Nr, lmax),
                             lambda b, e: (b, e, 0, 0)),
            ],
            out_specs=pl.BlockSpec((pl.Squeezed(), e_blk, Nr, Nr),
                                   lambda b, e: (b, e, 0, 0)),
        ),
        compiler_params=pltpu.CompilerParams(
            dimension_semantics=("parallel", "parallel"),
            vmem_limit_bytes=vmem_limit,
        ),
    )(xp)

    return out[:, :epochs, :N, :N]


# ----------------------------------------------------------------------------
# Public wrapper.
# ----------------------------------------------------------------------------
def e2r_forward(x, epochs, *, force_repack=False):
    """Pallas implementation of E2R.forward.

    x: any shape that squeezes to (B, N, T) or (N, T) (mirrors torch .squeeze(),
       which drops *all* size-1 dims).
    returns: (B, epochs, N, N)  (B = 1 in the batchless case).
    """
    epochs = int(epochs)
    x = jnp.squeeze(x)
    if x.ndim == 2:
        x = x[None]                                  # (1, N, T)
    assert x.ndim == 3, f"expected 3-D after squeeze, got {x.shape}"
    B, N, T = x.shape

    if not jnp.issubdtype(x.dtype, jnp.floating):
        x = x.astype(jnp.float32)
    out_dtype = x.dtype                              # MXU still accumulates in f32

    lens = patch_len(T, epochs)
    starts, s = [], 0
    for le in lens:
        starts.append(s)
        s += le
    lmax = max(lens) if lens else 1
    Nr = _round_up(N, 8)

    in_bytes = jnp.dtype(x.dtype).itemsize
    out_bytes = jnp.dtype(out_dtype).itemsize
    budget, vmem_limit = _vmem_budget_bytes()

    # Estimated VMEM footprint of one fused grid step (VMEM layouts are
    # lane-padded to 128 / sublane-padded to 8 even though HBM reads are not).
    fused_vmem = (
        2 * Nr * _lane(T) * in_bytes                         # double-buffered slab
        + 2 * epochs * Nr * _lane(N) * out_bytes             # double-buffered output
        + Nr * _lane(lmax) * in_bytes + Nr * _lane(N) * 4    # chunk / gram temporaries
    )

    if not force_repack and fused_vmem <= budget:
        return _e2r_fused(x, epochs, starts, lens, out_dtype, vmem_limit)
    return _e2r_repack(x, epochs, lens, lmax, Nr, out_dtype, budget, vmem_limit)


def e2r_reference(x, epochs):
    """Pure-JAX reference mirroring the torch module."""
    x = jnp.squeeze(x)
    if x.ndim == 2:
        x = x[None]
    lens = patch_len(x.shape[-1], int(epochs))
    outs, start = [], 0
    for le in lens:
        c = x[:, :, start:start + le]
        outs.append(jnp.einsum("bnt,bmt->bnm", c, c))
        start += le
    return jnp.stack(outs, axis=1)                    # (B, epochs, N, N)


if __name__ == "__main__":
    key = jax.random.PRNGKey(0)
    cases = [
        ((2, 1, 8, 16), 4, False),   # batched, evenly divisible (fused path)
        ((1, 1, 8, 18), 4, False),   # batchless after squeeze + ragged chunks
        ((2, 1, 6, 16), 4, False),   # channel count not a multiple of 8
        ((2, 1, 8, 16), 4, True),    # fallback: divisible reshape repack branch
        ((2, 1, 6, 18), 4, True),    # fallback: ragged chunks + row padding
        ((1, 1, 8, 15), 3, True),    # fallback: B==1 even-grid split + epoch padding
    ]
    for i, (shape, epochs, force) in enumerate(cases):
        key, sub = jax.random.split(key)
        x = jax.random.normal(sub, shape, dtype=jnp.float32)
        out = jax.block_until_ready(e2r_forward(x, epochs, force_repack=force))
        ref = e2r_reference(x, epochs)
        assert out.shape == ref.shape, (i, out.shape, ref.shape)
        assert jnp.allclose(out, ref, atol=1e-4, rtol=1e-4), f"mismatch in case {i}"

    print("KERNEL_OK")
</pallas_src>

<mosaic_0001>
module attributes {stable_mosaic.version = 11 : i64} {
  func.func @kernel(%arg0: i32, %arg1: memref<1x8x16xf32, #tpu.memory_space<vmem>>, %arg2: memref<1x4x8x8xf32, #tpu.memory_space<vmem>>) attributes {dimension_semantics = [#tpu.dimension_semantics<parallel>], iteration_bounds = array<i64: 2>, scalar_prefetch = 0 : i64, scratch_operands = 0 : i64, tpu.core_type = #tpu.core_type<tc>, window_params = [{transform_indices = @transform_0, window_bounds = array<i64: 1, 8, 16>}, {transform_indices = @transform_1, window_bounds = array<i64: 1, 4, 8, 8>}]} {
    %c0 = arith.constant 0 : index
    %c0_0 = arith.constant 0 : index
    %c0_1 = arith.constant 0 : index
    %0 = vector.load %arg1[%c0, %c0_0, %c0_1] : memref<1x8x16xf32, #tpu.memory_space<vmem>>, vector<1x8x4xf32>
    %1 = vector.shape_cast %0 : vector<1x8x4xf32> to vector<8x4xf32>
    %cst = arith.constant dense<0.000000e+00> : vector<8x8xf32>
    %2 = tpu.matmul %1, %1, %cst {dimension_numbers = #tpu.dot_dimension_numbers<[1], [1], [0], [0], [0, 0, 1, 0], [], []>} : vector<8x4xf32>, vector<8x4xf32>, vector<8x8xf32> -> vector<8x8xf32>
    %c0_2 = arith.constant 0 : index
    %c0_3 = arith.constant 0 : index
    %c0_4 = arith.constant 0 : index
    %c0_5 = arith.constant 0 : index
    %3 = vector.load %arg2[%c0_2, %c0_3, %c0_4, %c0_5] : memref<1x4x8x8xf32, #tpu.memory_space<vmem>>, vector<1x1x8x8xf32>
    %4 = vector.shape_cast %3 : vector<1x1x8x8xf32> to vector<8x8xf32>
    %5 = vector.shape_cast %2 : vector<8x8xf32> to vector<1x1x8x8xf32>
    tpu.vector_store %arg2[%c0_2, %c0_3, %c0_4, %c0_5], %5 {strides = array<i32>} : memref<1x4x8x8xf32, #tpu.memory_space<vmem>>, vector<1x1x8x8xf32>,
    %c0_6 = arith.constant 0 : index
    %c0_7 = arith.constant 0 : index
    %c4 = arith.constant 4 : index
    %6 = vector.load %arg1[%c0_6, %c0_7, %c4] : memref<1x8x16xf32, #tpu.memory_space<vmem>>, vector<1x8x4xf32>
    %7 = vector.shape_cast %6 : vector<1x8x4xf32> to vector<8x4xf32>
    %cst_8 = arith.constant dense<0.000000e+00> : vector<8x8xf32>
    %8 = tpu.matmul %7, %7, %cst_8 {dimension_numbers = #tpu.dot_dimension_numbers<[1], [1], [0], [0], [0, 0, 1, 0], [], []>} : vector<8x4xf32>, vector<8x4xf32>, vector<8x8xf32> -> vector<8x8xf32>
    %c0_9 = arith.constant 0 : index
    %c1 = arith.constant 1 : index
    %c0_10 = arith.constant 0 : index
    %c0_11 = arith.constant 0 : index
    %9 = vector.load %arg2[%c0_9, %c1, %c0_10, %c0_11] : memref<1x4x8x8xf32, #tpu.memory_space<vmem>>, vector<1x1x8x8xf32>
    %10 = vector.shape_cast %9 : vector<1x1x8x8xf32> to vector<8x8xf32>
    %11 = vector.shape_cast %8 : vector<8x8xf32> to vector<1x1x8x8xf32>
    tpu.vector_store %arg2[%c0_9, %c1, %c0_10, %c0_11], %11 {strides = array<i32>} : memref<1x4x8x8xf32, #tpu.memory_space<vmem>>, vector<1x1x8x8xf32>,
    %c0_12 = arith.constant 0 : index
    %c0_13 = arith.constant 0 : index
    %c8 = arith.constant 8 : index
    %12 = vector.load %arg1[%c0_12, %c0_13, %c8] : memref<1x8x16xf32, #tpu.memory_space<vmem>>, vector<1x8x4xf32>
    %13 = vector.shape_cast %12 : vector<1x8x4xf32> to vector<8x4xf32>
    %cst_14 = arith.constant dense<0.000000e+00> : vector<8x8xf32>
    %14 = tpu.matmul %13, %13, %cst_14 {dimension_numbers = #tpu.dot_dimension_numbers<[1], [1], [0], [0], [0, 0, 1, 0], [], []>} : vector<8x4xf32>, vector<8x4xf32>, vector<8x8xf32> -> vector<8x8xf32>
    %c0_15 = arith.constant 0 : index
    %c2 = arith.constant 2 : index
    %c0_16 = arith.constant 0 : index
    %c0_17 = arith.constant 0 : index
    %15 = vector.load %arg2[%c0_15, %c2, %c0_16, %c0_17] : memref<1x4x8x8xf32, #tpu.memory_space<vmem>>, vector<1x1x8x8xf32>
    %16 = vector.shape_cast %15 : vector<1x1x8x8xf32> to vector<8x8xf32>
    %17 = vector.shape_cast %14 : vector<8x8xf32> to vector<1x1x8x8xf32>
    tpu.vector_store %arg2[%c0_15, %c2, %c0_16, %c0_17], %17 {strides = array<i32>} : memref<1x4x8x8xf32, #tpu.memory_space<vmem>>, vector<1x1x8x8xf32>,
    %c0_18 = arith.constant 0 : index
    %c0_19 = arith.constant 0 : index
    %c12 = arith.constant 12 : index
    %18 = vector.load %arg1[%c0_18, %c0_19, %c12] : memref<1x8x16xf32, #tpu.memory_space<vmem>>, vector<1x8x4xf32>
    %19 = vector.shape_cast %18 : vector<1x8x4xf32> to vector<8x4xf32>
    %cst_20 = arith.constant dense<0.000000e+00> : vector<8x8xf32>
    %20 = tpu.matmul %19, %19, %cst_20 {dimension_numbers = #tpu.dot_dimension_numbers<[1], [1], [0], [0], [0, 0, 1, 0], [], []>} : vector<8x4xf32>, vector<8x4xf32>, vector<8x8xf32> -> vector<8x8xf32>
    %c0_21 = arith.constant 0 : index
    %c3 = arith.constant 3 : index
    %c0_22 = arith.constant 0 : index
    %c0_23 = arith.constant 0 : index
    %21 = vector.load %arg2[%c0_21, %c3, %c0_22, %c0_23] : memref<1x4x8x8xf32, #tpu.memory_space<vmem>>, vector<1x1x8x8xf32>
    %22 = vector.shape_cast %21 : vector<1x1x8x8xf32> to vector<8x8xf32>
    %23 = vector.shape_cast %20 : vector<8x8xf32> to vector<1x1x8x8xf32>
    tpu.vector_store %arg2[%c0_21, %c3, %c0_22, %c0_23], %23 {strides = array<i32>} : memref<1x4x8x8xf32, #tpu.memory_space<vmem>>, vector<1x1x8x8xf32>,
    return
  }
  func.func @transform_0(%arg0: i32) -> (i32, i32, i32) {
    %c0_i32 = arith.constant 0 : i32
    %c0_i32_0 = arith.constant 0 : i32
    %c0_i32_1 = arith.constant 0 : i32
    return %arg0, %c0_i32, %c0_i32_0 : i32, i32, i32
  }
  func.func @transform_1(%arg0: i32) -> (i32, i32, i32, i32) {
    %c0_i32 = arith.constant 0 : i32
    %c0_i32_0 = arith.constant 0 : i32
    %c0_i32_1 = arith.constant 0 : i32
    %c0_i32_2 = arith.constant 0 : i32
    return %arg0, %c0_i32, %c0_i32_0, %c0_i32_1 : i32, i32, i32, i32
  }
}

</mosaic_0001>

<bundles_post_ra>
// kernel: tpu_custom_call.1
= control target key start
LH: loop header
LB: loop body
LE: loop exit
PB: predicated region body
PF: predicated region fallthrough
CT: control target
= control target key end

     0   :  { %6 = vsyncpa [#allocation3], 0  ;;  %s651_s0 = inlined_call_operand.hbm [shape: f32[2,8,16], index: 0, kind: input, shape index: {}]   ;;  %s652_s1 = inlined_call_operand.hbm [shape: f32[2,4,8,8], index: 1, kind: output, shape index: {}]  }
   0x1   :  { %8 = vsyncpa [#allocation3 + $0x1], 0 }
   0x2   :  { %9 = vsyncpa [#allocation4], 0 }
   0x3   :  { %11 = vsyncpa [#allocation4 + $0x1], 0  ;;  %s523_s6 = smov 0   ;;  %s525_s7 = smov 0  }
   0x4   :  { %s527_s8 = smov 0   ;;  %s529_s9 = smov 0  }
   0x5 LB: > { %s544_s10 = sadd.s32 4294967295, %s506_s9   ;;  %s334_s11 = sadd.s32 4294967294, %s506_s9   ;;  %s506_s9 = sphi %s529_s9, %s662_s9   ;;  %s502_s8 = sphi %s527_s8, %s661_s8   ;;  %s498_s7 = sphi %s525_s7, %s660_s7   ;;  %s494_s6 = sphi %s523_s6, %s659_s6  }
   0x6   : > { %s548_s12 = sadd.s32 1, %s506_s9   ;;  %s24_s13 = sadd.s32 1, %s502_s8 }
   0x7   : > { %s21_s14 = ssub.s32 %s506_s9, %s548_s12  ;;  %p31_p0 = scmp.ne.s32.totalorder %s502_s8, %s498_s7 }
   0x8   : > { %p22_p1 = scmp.eq.s32.totalorder %s21_s14, 0  ;;  %p32_p2 = scmp.eq.s32.totalorder %s506_s9, 0 }
   0x9   : > { %p37_p3 = scmp.ne.s32.totalorder %s498_s7, %s494_s6  ;;  %p38_p4 = scmp.eq.s32.totalorder %s544_s10, 0 }
   0xa   : > { %s560_s15 = scalar_select %p22_p1, %s502_s8, %s24_s13  }
   0xb   : > { %p562_p5 = por %p32_p2, %p31_p0  ;;  %p566_p6 = por %p38_p4, %p37_p3 }
   0xc   : > { %p61_p7 = scmp.eq.s32.totalorder %s544_s10, 1  ;;  %p67_p8 = scmp.eq.s32.totalorder %s334_s11, 1 }
   0xd   : > { %p371_p10 = scmp.lt.s32.totalorder %s506_s9, 2  ;;  %s87_s20 = sand.u32 1, %s502_s8  }
   0xe   : > { %p573_p11 = por %p61_p7, %p31_p0  ;;  %p577_p12 = por %p67_p8, %p37_p3 }
   0xf   : > { %s338_s21 = sshll.u32 %s506_s9, 3  ;;  %s337_s22 = sshll.u32 %s87_s20, 3 }
  0x10   : > { %s95_s25 = scalar_lea.hbm %s651_s0, %s338_s21  ;;  %s91_s27 = scalar_lea.vmem [#allocation2], %s337_s22 }
  0x11   : > { %s97_s26 = sshll.u32 %s95_s25, 4  ;;  %s99_s28 = sshll.u32 %s91_s27, 4  ;;  %s98_s26 = int_to_ptr.hbm [resolvable:$true] %s97_s26  ;;  %s100_s28 = int_to_ptr.vmem [resolvable:$true] %s99_s28 }
  0x12   : > { %p588_p13 = pnand %p371_p10, %p562_p5  ;;  %p339_p0 = scmp.ge.s32.totalorder %s506_s9, 1 }
  0x13   : > { %p104_p1 = scmp.lt.s32.totalorder %s506_s9, 3  ;;  %s88_s30 = scalar_lea.sflag [#allocation3], %s87_s20 }
  0x14   : > { %s410_s2 = sshra.s32 %s98_s26, 4  ;;  %p414_p3 = pneg %p588_p13  ;;  %s411_s2 = int_to_ptr.hbm [resolvable:$true] %s410_s2 }
  0x15   : > { %s412_s3 = scalar_lea.hbm %s411_s2, 8  ;;  %s417_s11 = scalar_lea.hbm %s651_s0, 16 }
  0x16   : > { %p413_p2 = scmp.ne.s32.totalorder %s411_s2, %s412_s3  ;;  %p418_p5 = scmp.lt.s32.totalorder %s411_s2, %s651_s0 }
  0x17   : > { %p419_p8 = scmp.lt.s32.totalorder %s417_s11, %s412_s3 }
  0x18   : > { %p415_p4 = pnand %p414_p3, %p413_p2 }
  0x19   : > { %p420_p10 = por %p419_p8, %p418_p5 }
  0x1a   : > { %p416_p7 = pneg %p415_p4 }
  0x1c   : > { %p421_p9 = pnand %p420_p10, %p416_p7 }
  0x1e   : > { %424 = shalt.err (!%p421_p9)
}
  0x1f   : > { %366 = dma.hbm_to_vmem [thread:$0]  (!%p588_p13), %s98_s26, 128, %s100_s28, %s88_s30  }
  0x20   : > { %p105_p2 = pnand %p339_p0, %p104_p1 }
  0x21   : > { %s609_s16 = sand.u32 (!%p105_p2), 1, %s498_s7  }
  0x22   : > { %108 = sbr.rel (%p105_p2) target bundleno = 303 (0x12f), region = 24  ;;  %s340_s20 = sshll.u32 (!%p105_p2), %s609_s16, 3 }
  0x23   : > { %s111_s21 = scalar_lea.sflag (!%p105_p2), [#allocation3], %s609_s16  ;;  %s114_s22 = scalar_lea.vmem (!%p105_p2), [#allocation2], %s340_s20 }
  0x27   : > { %485 = dma.done.wait (%p566_p6), %s111_s21, 128  }
  0x28   : > { %487 = vsyncadd (%p566_p6), %s111_s21, 4294967168  ;;  %v189_v0 = vld [vmem:[%s114_s22] sm:$0xff]  ;;  %s508_s23 = smov 120   ;;  %s509_s24 = smov 124   ;;  %vm135_vm0 = vcmask 31744   ;;  %vm159_vm1 = vcmask 64512  }
  0x29   : > { %191 = vrot.lane.b32.xlu0 %v189_v0, %s508_s23  ;;  %163 = vrot.lane.b32.xlu1 %v189_v0, %s509_s24  ;;  %s510_s25 = smov 116   ;;  %s341_s17 = sshll.u32 %s609_s16, 5 }
  0x2a   : > { %342 = vmatpush.xpose.msk.msra.mxu0 %vm135_vm0, %v189_v0  ;;  %s133_s26 = scalar_lea.vmem [#allocation5], %s341_s17  ;;  %s358_s27 = sshll.u32 %s544_s10, 5 }
  0x2b   : > { %s257_s30 = scalar_lea.hbm %s652_s1, %s358_s27  ;;  %s258_s2 = sshll.u32 %s133_s26, 4  ;;  %s259_s2 = int_to_ptr.vmem [resolvable:$true] %s258_s2 }
  0x2c   : > { %s260_s3 = sshll.u32 %s257_s30, 4  ;;  %s246_s4 = scalar_lea.sflag [#allocation4], %s609_s16  ;;  %s261_s3 = int_to_ptr.hbm [resolvable:$true] %s260_s3 }
  0x2d   : > { %343 = vmatmul.msk.f32.vlgmr.msra.gmra.mxu0 %vm135_vm0, %v189_v0  ;;  %s454_s5 = sshra.s32 %s261_s3, 4  ;;  %s460_s14 = scalar_lea.hbm %s652_s1, 64  ;;  %s455_s5 = int_to_ptr.hbm [resolvable:$true] %s454_s5 }
  0x2e   : > { %s456_s11 = scalar_lea.hbm %s455_s5, 32  ;;  %p461_p0 = scmp.lt.s32.totalorder %s455_s5, %s652_s1 }
  0x2f   : > { %p457_p6 = scmp.ne.s32.totalorder %s455_s5, %s456_s11  ;;  %p462_p1 = scmp.lt.s32.totalorder %s460_s14, %s456_s11 }
  0x31   : > { %219 = vrot.lane.b32.xlu0 %v189_v0, %s510_s25  ;;  %p458_p9 = pnand %p457_p6, %p573_p11  ;;  %p463_p3 = por %p462_p1, %p461_p0 }
  0x33   : > { %p459_p13 = pneg %p458_p9 }
  0x35   : > { %p464_p4 = pnand %p463_p3, %p459_p13 }
  0x9b   : > { %v192_v1 = vpop.permute.xlu0 %191  ;;  %v164_v2 = vpop.permute.xlu1 %163 }
  0x9c   : > { %347 = vmatpush.xpose.msk.msra.mxu2 %vm135_vm0, %v192_v1  ;;  %344 = vmatpush.xpose.msk.msra.mxu1 %vm135_vm0, %v164_v2 }
  0x9f   : > { %348 = vmatmul.msk.f32.vlgmr.msra.gmra.mxu2 %vm135_vm0, %v192_v1  ;;  %345 = vmatmul.msk.f32.vlgmr.msra.gmra.mxu1 %vm135_vm0, %v164_v2 }
  0xa3   : > { %v220_v3 = vpop.permute.xlu0 %219 }
  0xa4   : > { %350 = vmatpush.xpose.msk.msra.mxu3 %vm135_vm0, %v220_v3 }
  0xa7   : > { %351 = vmatmul.msk.f32.vlgmr.msra.gmra.mxu3 %vm135_vm0, %v220_v3 }
  0xaa   : > { %v156_v4 = vpop.f32.mrf.mxu0 }
  0xab   : > { %160 = vst.msk [vmem:[%s133_s26] sm:$0xff] %vm159_vm1, %v156_v4 }
 0x11c   : > { %v184_v5 = vpop.f32.mrf.mxu1 }
 0x11d   : > { %346 = vst.msk [vmem:[%s133_s26 + $0x8] sm:$0xff] %vm159_vm1, %v184_v5 }
 0x122   : > { %v212_v6 = vpop.f32.mrf.mxu2 }
 0x123   : > { %349 = vst.msk [vmem:[%s133_s26 + $0x10] sm:$0xff] %vm159_vm1, %v212_v6 }
 0x12a   : > { %v240_v7 = vpop.f32.mrf.mxu3 }
 0x12b   : > { %352 = vst.msk [vmem:[%s133_s26 + $0x18] sm:$0xff] %vm159_vm1, %v240_v7 }
 0x12c   : > { %467 = shalt.err (!%p464_p4)
}
 0x12d   : > { %s511_s16 = smov 128   ;;  %s512_s22 = smov 8  }
 0x12e   : > { %361 = dma.vmem_to_hbm [thread:$0]  (%p573_p11), %s259_s2, 512, %s261_s3, %s246_s4, %s511_s16, %s511_s16, %s512_s22  }
 0x12f PF: > { %s275_s23 = sand.u32 1, %s494_s6   ;;  %p658_p7 = scmp.ge.s32.totalorder %s506_s9, 2 }
 0x130   : > { %s276_s24 = scalar_lea.sflag [#allocation4], %s275_s23 }
 0x131   : > { %p368_p5 = pnand %p658_p7, %p577_p12 }
 0x133   : > { %p369_p8 = pneg %p368_p5 }
 0x135   : > { %489 = dma.done.wait (%p369_p8), %s276_s24, 512  }
 0x136   : > { %491 = vsyncadd (%p369_p8), %s276_s24, 4294966784  ;;  %p14_p10 = scmp.ge.s32.totalorder %s548_s12, 4   ;;  %s659_s6 = smov %s498_s7 }
 0x137   : > { %s660_s7 = smov %s502_s8  ;;  %s661_s8 = smov %s560_s15 }
 0x138   : > { %s662_s9 = smov %s548_s12  ;;  %16 = sbr.rel (!%p14_p10) target bundleno = 5 (0x5), region = 72 }
 0x13d   :  { %282 = vsyncpa [#allocation3], 1 }
 0x13e   :  { %284 = vsyncpa [#allocation3 + $0x1], 1 }
 0x13f   :  { %285 = vsyncpa [#allocation4], 1 }
 0x140   :  { %287 = vsyncpa [#allocation4 + $0x1], 1 }

</bundles_post_ra>
